<compile_context>
chip_gen: v7x
topology: tpu7x:2x2x1
jax: 0.10.0
libtpu: 0.0.40
codegen_flags: <defaults>
</compile_context>

<pallas_src>
import jax
import jax.numpy as jnp
from jax.experimental import pallas as pl
from jax.experimental.pallas import tpu as pltpu


SMOOTH = 1e-6
LANES = 128


def _round_up(x: int, m: int) -> int:
    return ((x + m - 1) // m) * m


def _device_kind() -> str:
    try:
        return jax.devices()[0].device_kind.lower()
    except Exception:
        return ""


def _make_dice_kernel(rows, block_rows, blocks_per_split, maybe_ragged):
    folds = block_rows // 8

    def kernel(p_ref, t_ref, inter_ref, union_ref, inter_acc, union_acc):
        j = pl.program_id(1)  # reduction axis (last, "arbitrary")

        @pl.when(j == 0)
        def _():
            inter_acc[...] = jnp.zeros_like(inter_acc)
            union_acc[...] = jnp.zeros_like(union_acc)

        def accumulate(p, t):
            # Per-step sublane fold straight into the small (8,128)
            # accumulators: the reshape is layout-aligned (groups of 8 rows =
            # one f32 vreg), so the sum over axis 0 is just `folds` vreg adds
            # on the VPU followed by one vreg accumulate -- no full-tile
            # scratch loads/stores.
            inter_acc[...] += jnp.sum((p * t).reshape(folds, 8, LANES), axis=0)
            union_acc[...] += jnp.sum((p + t).reshape(folds, 8, LANES), axis=0)

        if maybe_ragged:
            logical_block = pl.program_id(0) * blocks_per_split + j
            row0 = logical_block * block_rows
            is_ragged = row0 + block_rows > rows  # int32 is fine up to ~2^31 elems

            @pl.when(jnp.logical_not(is_ragged))
            def _():
                accumulate(p_ref[...].astype(jnp.float32),
                           t_ref[...].astype(jnp.float32))

            @pl.when(is_ragged)
            def _():
                # Zero out rows past the logical end (ragged last tile and any
                # fully-overhanging duplicate tile whose DMA index was clamped).
                row_ids = row0 + jax.lax.broadcasted_iota(
                    jnp.int32, (block_rows, LANES), 0)
                valid = row_ids < rows
                accumulate(
                    jnp.where(valid, p_ref[...].astype(jnp.float32), 0.0),
                    jnp.where(valid, t_ref[...].astype(jnp.float32), 0.0))
        else:
            accumulate(p_ref[...].astype(jnp.float32),
                       t_ref[...].astype(jnp.float32))

        @pl.when(j == pl.num_programs(1) - 1)
        def _():
            # Lane-dense (8,128) store of the per-split partial sums.
            inter_ref[...] = inter_acc[...]
            union_ref[...] = union_acc[...]

    return kernel


def dice_loss(preds: jax.Array, targets: jax.Array) -> jax.Array:
    """Dice loss matching the PyTorch DiceLoss.forward semantics."""
    p = jnp.reshape(preds, (-1,))
    t = jnp.reshape(targets, (-1,))
    n = p.shape[0]
    if n == 0:
        # intersection = union = 0  ->  dice = smooth/smooth = 1  ->  loss = 0
        return jnp.asarray(0.0, jnp.float32)

    # Pad only when the flat length is not a multiple of 128 (needed for the
    # free reshape to a lane-dense slab); padded zeros are sum-neutral.
    if n % LANES != 0:
        pad = LANES - n % LANES
        p = jnp.pad(p, (0, pad))
        t = jnp.pad(t, (0, pad))
    rows = p.shape[0] // LANES
    p2 = p.reshape(rows, LANES)
    t2 = t.reshape(rows, LANES)

    kind = _device_kind()
    is_v7x = "v7" in kind

    # HBM-bound: stream 2-4 MiB per array per step so the fixed per-step
    # pipeline overhead amortizes (~79-94% of roofline per the review).
    max_block_rows = 8192 if is_v7x else 4096

    # Sublane granule depends on dtype packing: f32 -> 8, bf16 -> 16, i8 -> 32.
    granule = max(
        8,
        32 // max(1, jnp.dtype(p2.dtype).itemsize),
        32 // max(1, jnp.dtype(t2.dtype).itemsize),
    )
    block_rows = min(max_block_rows, _round_up(rows, granule))
    total_blocks = pl.cdiv(rows, block_rows)

    # Only split the reduction when the chip actually has two TensorCores
    # (v7x). On 1-TC chips (v5e/v6e) the split is pure overhead, and for odd
    # block counts it would force a wasted, fully-masked duplicate tile.
    num_splits = 2 if (is_v7x and total_blocks >= 2) else 1
    blocks_per_split = pl.cdiv(total_blocks, num_splits)
    maybe_ragged = (num_splits * blocks_per_split * block_rows) != rows

    def in_idx(i, j):
        # Clamp so an over-hanging (fully masked) step never DMAs out of bounds.
        return (jnp.minimum(i * blocks_per_split + j, total_blocks - 1), 0)

    kernel = _make_dice_kernel(rows, block_rows, blocks_per_split, maybe_ragged)

    # VMEM budget: 2 inputs x 2 pipeline buffers x tile bytes + slack
    # (accumulators/outputs are tiny (8,128) slabs). Cap at 32 MiB so it stays
    # comfortable under v7x's scoped default / 64 MiB physical.
    in_bytes_per_step = block_rows * LANES * (
        jnp.dtype(p2.dtype).itemsize + jnp.dtype(t2.dtype).itemsize)
    vmem_limit = int(min(32 << 20, max(16 << 20, 2 * in_bytes_per_step + (2 << 20))))

    if num_splits == 2:
        # TODO(synk): confirm CORE_PARALLEL actually shards axis 0 across
        # v7x's two TensorCores on the target runtime (plain "parallel" is
        # documented to be a near-no-op for codegen).
        split_sem = getattr(pltpu, "CORE_PARALLEL", "parallel")
        sems = (split_sem, "arbitrary")
    else:
        sems = ("arbitrary", "arbitrary")

    inter_part, union_part = pl.pallas_call(
        kernel,
        out_shape=(
            jax.ShapeDtypeStruct((num_splits * 8, LANES), jnp.float32),
            jax.ShapeDtypeStruct((num_splits * 8, LANES), jnp.float32),
        ),
        grid_spec=pltpu.PrefetchScalarGridSpec(
            num_scalar_prefetch=0,
            grid=(num_splits, blocks_per_split),
            in_specs=[
                pl.BlockSpec((block_rows, LANES), in_idx),
                pl.BlockSpec((block_rows, LANES), in_idx),
            ],
            out_specs=(
                pl.BlockSpec((8, LANES), lambda i, j: (i, 0)),
                pl.BlockSpec((8, LANES), lambda i, j: (i, 0)),
            ),
            scratch_shapes=[
                pltpu.VMEM((8, LANES), jnp.float32),
                pltpu.VMEM((8, LANES), jnp.float32),
            ],
        ),
        compiler_params=pltpu.CompilerParams(
            dimension_semantics=sems,
            vmem_limit_bytes=vmem_limit,
        ),
    )(p2, t2)

    # Tiny epilogue combining the per-split (8,128) partials.
    intersection = jnp.sum(inter_part)
    union = jnp.sum(union_part)
    dice_coeff = (2.0 * intersection + SMOOTH) / (union + SMOOTH)
    return 1.0 - dice_coeff


def dice_loss_ref(preds, targets):
    p = jnp.reshape(preds, (-1,)).astype(jnp.float32)
    t = jnp.reshape(targets, (-1,)).astype(jnp.float32)
    intersection = jnp.sum(p * t)
    union = jnp.sum(p) + jnp.sum(t)
    return 1.0 - (2.0 * intersection + SMOOTH) / (union + SMOOTH)


if __name__ == "__main__":
    key = jax.random.PRNGKey(0)
    kp, kt, kp2, kt2 = jax.random.split(key, 4)

    # NCHW-style segmentation predictions/targets; flattened inside the loss.
    preds = jax.nn.sigmoid(jax.random.normal(kp, (2, 4, 16, 16), jnp.float32))
    targets = (jax.random.uniform(kt, (2, 4, 16, 16)) > 0.5).astype(jnp.float32)

    loss = jax.block_until_ready(dice_loss(preds, targets))
    ref = jax.block_until_ready(dice_loss_ref(preds, targets))
    assert jnp.allclose(loss, ref, atol=1e-5, rtol=1e-5), (loss, ref)

    # Ragged shape (flat length not a multiple of 128) to exercise the masked
    # edge-tile path.
    preds_r = jax.nn.sigmoid(jax.random.normal(kp2, (3, 5, 7), jnp.float32))
    targets_r = (jax.random.uniform(kt2, (3, 5, 7)) > 0.5).astype(jnp.float32)
    loss_r = jax.block_until_ready(dice_loss(preds_r, targets_r))
    ref_r = jax.block_until_ready(dice_loss_ref(preds_r, targets_r))
    assert jnp.allclose(loss_r, ref_r, atol=1e-5, rtol=1e-5), (loss_r, ref_r)

    print("KERNEL_OK")
</pallas_src>

<mosaic_0001>
module attributes {stable_mosaic.version = 11 : i64} {
  func.func @kernel(%arg0: i32, %arg1: i32, %arg2: memref<16x128xf32, #tpu.memory_space<vmem>>, %arg3: memref<16x128xf32, #tpu.memory_space<vmem>>, %arg4: memref<8x128xf32, #tpu.memory_space<vmem>>, %arg5: memref<8x128xf32, #tpu.memory_space<vmem>>, %arg6: memref<8x128xf32, #tpu.memory_space<vmem>>, %arg7: memref<8x128xf32, #tpu.memory_space<vmem>>) attributes {dimension_semantics = [#tpu.dimension_semantics<arbitrary>, #tpu.dimension_semantics<arbitrary>], iteration_bounds = array<i64: 1, 1>, scalar_prefetch = 0 : i64, scratch_operands = 2 : i64, tpu.core_type = #tpu.core_type<tc>, window_params = [{transform_indices = @transform_0, window_bounds = array<i64: 16, 128>}, {transform_indices = @transform_1, window_bounds = array<i64: 16, 128>}, {transform_indices = @transform_2, window_bounds = array<i64: 8, 128>}, {transform_indices = @transform_3, window_bounds = array<i64: 8, 128>}]} {
    %c0_i32 = arith.constant 0 : i32
    %0 = arith.cmpi eq, %arg1, %c0_i32 : i32
    %1 = arith.extui %0 : i1 to i32
    %c0_i32_0 = arith.constant 0 : i32
    %2 = arith.cmpi ne, %1, %c0_i32_0 : i32
    scf.if %2 {
      %cst_15 = arith.constant 0.000000e+00 : f32
      %20 = vector.broadcast %cst_15 : f32 to vector<8x128xf32>
      %c0_16 = arith.constant 0 : index
      %c0_17 = arith.constant 0 : index
      %21 = vector.load %arg6[%c0_16, %c0_17] : memref<8x128xf32, #tpu.memory_space<vmem>>, vector<8x128xf32>
      tpu.vector_store %arg6[%c0_16, %c0_17], %20 {strides = array<i32>} : memref<8x128xf32, #tpu.memory_space<vmem>>, vector<8x128xf32>,
      %cst_18 = arith.constant 0.000000e+00 : f32
      %22 = vector.broadcast %cst_18 : f32 to vector<8x128xf32>
      %c0_19 = arith.constant 0 : index
      %c0_20 = arith.constant 0 : index
      %23 = vector.load %arg7[%c0_19, %c0_20] : memref<8x128xf32, #tpu.memory_space<vmem>>, vector<8x128xf32>
      tpu.vector_store %arg7[%c0_19, %c0_20], %22 {strides = array<i32>} : memref<8x128xf32, #tpu.memory_space<vmem>>, vector<8x128xf32>,
    } else {
    }
    %c0 = arith.constant 0 : index
    %c0_1 = arith.constant 0 : index
    %3 = vector.load %arg2[%c0, %c0_1] : memref<16x128xf32, #tpu.memory_space<vmem>>, vector<16x128xf32>
    %c0_2 = arith.constant 0 : index
    %c0_3 = arith.constant 0 : index
    %4 = vector.load %arg3[%c0_2, %c0_3] : memref<16x128xf32, #tpu.memory_space<vmem>>, vector<16x128xf32>
    %c0_4 = arith.constant 0 : index
    %c0_5 = arith.constant 0 : index
    %5 = vector.load %arg6[%c0_4, %c0_5] : memref<8x128xf32, #tpu.memory_space<vmem>>, vector<8x128xf32>
    %6 = arith.mulf %3, %4 : vector<16x128xf32>
    %7 = vector.shape_cast %6 : vector<16x128xf32> to vector<2x8x128xf32>
    %cst = arith.constant dense<0.000000e+00> : vector<8x128xf32>
    %8 = vector.multi_reduction <add>, %7, %cst [0] : vector<2x8x128xf32> to vector<8x128xf32>
    %9 = arith.addf %5, %8 : vector<8x128xf32>
    %c0_6 = arith.constant 0 : index
    %c0_7 = arith.constant 0 : index
    %10 = vector.load %arg6[%c0_6, %c0_7] : memref<8x128xf32, #tpu.memory_space<vmem>>, vector<8x128xf32>
    tpu.vector_store %arg6[%c0_6, %c0_7], %9 {strides = array<i32>} : memref<8x128xf32, #tpu.memory_space<vmem>>, vector<8x128xf32>,
    %c0_8 = arith.constant 0 : index
    %c0_9 = arith.constant 0 : index
    %11 = vector.load %arg7[%c0_8, %c0_9] : memref<8x128xf32, #tpu.memory_space<vmem>>, vector<8x128xf32>
    %12 = arith.addf %3, %4 : vector<16x128xf32>
    %13 = vector.shape_cast %12 : vector<16x128xf32> to vector<2x8x128xf32>
    %cst_10 = arith.constant dense<0.000000e+00> : vector<8x128xf32>
    %14 = vector.multi_reduction <add>, %13, %cst_10 [0] : vector<2x8x128xf32> to vector<8x128xf32>
    %15 = arith.addf %11, %14 : vector<8x128xf32>
    %c0_11 = arith.constant 0 : index
    %c0_12 = arith.constant 0 : index
    %16 = vector.load %arg7[%c0_11, %c0_12] : memref<8x128xf32, #tpu.memory_space<vmem>>, vector<8x128xf32>
    tpu.vector_store %arg7[%c0_11, %c0_12], %15 {strides = array<i32>} : memref<8x128xf32, #tpu.memory_space<vmem>>, vector<8x128xf32>,
    %c0_i32_13 = arith.constant 0 : i32
    %17 = arith.cmpi eq, %arg1, %c0_i32_13 : i32
    %18 = arith.extui %17 : i1 to i32
    %c0_i32_14 = arith.constant 0 : i32
    %19 = arith.cmpi ne, %18, %c0_i32_14 : i32
    scf.if %19 {
      %c0_15 = arith.constant 0 : index
      %c0_16 = arith.constant 0 : index
      %20 = vector.load %arg6[%c0_15, %c0_16] : memref<8x128xf32, #tpu.memory_space<vmem>>, vector<8x128xf32>
      %c0_17 = arith.constant 0 : index
      %c0_18 = arith.constant 0 : index
      %21 = vector.load %arg4[%c0_17, %c0_18] : memref<8x128xf32, #tpu.memory_space<vmem>>, vector<8x128xf32>
      tpu.vector_store %arg4[%c0_17, %c0_18], %20 {strides = array<i32>} : memref<8x128xf32, #tpu.memory_space<vmem>>, vector<8x128xf32>,
      %c0_19 = arith.constant 0 : index
      %c0_20 = arith.constant 0 : index
      %22 = vector.load %arg7[%c0_19, %c0_20] : memref<8x128xf32, #tpu.memory_space<vmem>>, vector<8x128xf32>
      %c0_21 = arith.constant 0 : index
      %c0_22 = arith.constant 0 : index
      %23 = vector.load %arg5[%c0_21, %c0_22] : memref<8x128xf32, #tpu.memory_space<vmem>>, vector<8x128xf32>
      tpu.vector_store %arg5[%c0_21, %c0_22], %22 {strides = array<i32>} : memref<8x128xf32, #tpu.memory_space<vmem>>, vector<8x128xf32>,
    } else {
    }
    return
  }
  func.func @transform_0(%arg0: i32, %arg1: i32) -> (i32, i32) {
    %c1_i32 = arith.constant 1 : i32
    %0 = arith.muli %arg0, %c1_i32 : i32
    %1 = arith.addi %0, %arg1 : i32
    %c0_i32 = arith.constant 0 : i32
    %2 = arith.minsi %1, %c0_i32 : i32
    %c0_i32_0 = arith.constant 0 : i32
    %c0_i32_1 = arith.constant 0 : i32
    return %2, %c0_i32_0 : i32, i32
  }
  func.func @transform_1(%arg0: i32, %arg1: i32) -> (i32, i32) {
    %c1_i32 = arith.constant 1 : i32
    %0 = arith.muli %arg0, %c1_i32 : i32
    %1 = arith.addi %0, %arg1 : i32
    %c0_i32 = arith.constant 0 : i32
    %2 = arith.minsi %1, %c0_i32 : i32
    %c0_i32_0 = arith.constant 0 : i32
    %c0_i32_1 = arith.constant 0 : i32
    return %2, %c0_i32_0 : i32, i32
  }
  func.func @transform_2(%arg0: i32, %arg1: i32) -> (i32, i32) {
    %c0_i32 = arith.constant 0 : i32
    %c0_i32_0 = arith.constant 0 : i32
    return %arg0, %c0_i32 : i32, i32
  }
  func.func @transform_3(%arg0: i32, %arg1: i32) -> (i32, i32) {
    %c0_i32 = arith.constant 0 : i32
    %c0_i32_0 = arith.constant 0 : i32
    return %arg0, %c0_i32 : i32, i32
  }
}

</mosaic_0001>

<bundles_post_ra>
// kernel: tpu_custom_call.1
= control target key start
LH: loop header
LB: loop body
LE: loop exit
PB: predicated region body
PF: predicated region fallthrough
CT: control target
= control target key end

     0   :  { %9 = vsyncpa [#allocation5], 0  ;;  %s302_s0 = inlined_call_operand.hbm [shape: f32[16,128], index: 0, kind: input, shape index: {}]   ;;  %s303_s1 = inlined_call_operand.hbm [shape: f32[16,128], index: 1, kind: input, shape index: {}]   ;;  %s304_s2 = inlined_call_operand.hbm [shape: f32[8,128], index: 2, kind: output, shape index: {0}]   ;;  %s305_s3 = inlined_call_operand.hbm [shape: f32[8,128], index: 3, kind: output, shape index: {1}]  }
   0x1   :  { %10 = vsyncpa [#allocation8], 0 }
   0x2   :  { %11 = vsyncpa [#allocation6], 0 }
   0x3   :  { %12 = vsyncpa [#allocation11], 0  ;;  %s228_s12 = smov [#allocation4]   ;;  %s132_s16 = scalar_lea.hbm %s302_s0, 256 }
   0x4   :  { %s24_s13 = sshll.u32 %s228_s12, 4  ;;  %p133_p0 = scmp.ne.s32.totalorder %s302_s0, %s132_s16  ;;  %s25_s13 = int_to_ptr.vmem [resolvable:$true] %s24_s13 }
   0x5   :  { %p136_p1 = scmp.lt.u32.totalorder %s132_s16, %s302_s0 }
   0x7   :  { %p138_p2 = pnand %p136_p1, %p133_p0 }
   0x9   :  { %141 = shalt.err (!%p138_p2)
}
   0xa   :  { %s142_s21 = scalar_lea.vmem %s25_s13, 256  ;;  %p147_p4 = scmp.lt.s32.totalorder %s25_s13, %s25_s13 }
   0xb   :  { %p143_p3 = scmp.ne.s32.totalorder %s25_s13, %s142_s21  ;;  %p148_p5 = scmp.lt.s32.totalorder %s142_s21, %s142_s21 }
   0xd   :  { %p149_p6 = por %p148_p5, %p147_p4 }
   0xf   :  { %p150_p7 = pnand %p149_p6, %p143_p3 }
  0x11   :  { %153 = shalt.err (!%p150_p7)
}
  0x12   :  { %s229_s22 = smov 128   ;;  %s230_s23 = smov 8  }
  0x13   :  { %30 = dma.hbm_to_vmem [thread:$0]  %s302_s0, 256, %s25_s13, [#allocation5], %s229_s22, %s229_s22, %s230_s23  }
  0x14   :  { %s231_s26 = smov [#allocation7]   ;;  %s154_s30 = scalar_lea.hbm %s303_s1, 256 }
  0x15   :  { %s42_s27 = sshll.u32 %s231_s26, 4  ;;  %p155_p8 = scmp.ne.s32.totalorder %s303_s1, %s154_s30  ;;  %s43_s27 = int_to_ptr.vmem [resolvable:$true] %s42_s27 }
  0x16   :  { %p158_p9 = scmp.lt.u32.totalorder %s154_s30, %s303_s1 }
  0x18   :  { %p160_p10 = pnand %p158_p9, %p155_p8 }
  0x1a   :  { %163 = shalt.err (!%p160_p10)
}
  0x1b   :  { %s164_s8 = scalar_lea.vmem %s43_s27, 256  ;;  %p169_p12 = scmp.lt.s32.totalorder %s43_s27, %s43_s27 }
  0x1c   :  { %p165_p11 = scmp.ne.s32.totalorder %s43_s27, %s164_s8  ;;  %p170_p13 = scmp.lt.s32.totalorder %s164_s8, %s164_s8 }
  0x1e   :  { %p171_p0 = por %p170_p13, %p169_p12 }
  0x20   :  { %p172_p1 = pnand %p171_p0, %p165_p11 }
  0x22   :  { %175 = shalt.err (!%p172_p1)
}
  0x23   :  { %48 = dma.hbm_to_vmem [thread:$0]  %s303_s1, 256, %s43_s27, [#allocation8], %s229_s22, %s229_s22, %s230_s23  }
  0x24   :  { %220 = dma.done.wait [#allocation5], 256  }
  0x25   :  { %221 = vsyncadd [#allocation5], 4294967040 }
  0x26   :  { %222 = dma.done.wait [#allocation8], 256  }
  0x27   :  { %223 = vsyncadd [#allocation8], 4294967040  ;;  %v69_v0 = vld [vmem:[#allocation4] sm:$0xff]  ;;  %v70_v1 = vld [vmem:[#allocation4 + $0x8] sm:$0xff]  ;;  %s232_s10 = smov [#allocation9]   ;;  %s233_s12 = smov [#allocation10]  }
  0x28   :  { %v71_v2 = vld [vmem:[#allocation7] sm:$0xff]  ;;  %v72_v3 = vld [vmem:[#allocation7 + $0x8] sm:$0xff]  ;;  %s98_s11 = sshll.u32 %s232_s10, 4  ;;  %s108_s13 = sshll.u32 %s233_s12, 4  ;;  %s99_s11 = int_to_ptr.vmem [resolvable:$true] %s98_s11  ;;  %s109_s13 = int_to_ptr.vmem [resolvable:$true] %s108_s13 }
  0x29   :  { %v74_v4 = vmul.f32 %v71_v2, %v69_v0  ;;  %v80_v5 = vadd.f32 %v71_v2, %v69_v0  ;;  %v75_v6 = vmul.f32 %v72_v3, %v70_v1  ;;  %v81_v7 = vadd.f32 %v72_v3, %v70_v1  ;;  %s176_s1 = scalar_lea.vmem %s99_s11, 128  ;;  %p181_p3 = scmp.lt.s32.totalorder %s99_s11, %s99_s11 }
  0x2a   :  { %p177_p2 = scmp.ne.s32.totalorder %s99_s11, %s176_s1  ;;  %p182_p4 = scmp.lt.s32.totalorder %s176_s1, %s176_s1 }
  0x2b   :  { %v76_v8 = vadd.f32 %v75_v6, %v74_v4  ;;  %v82_v9 = vadd.f32 %v81_v7, %v80_v5 }
  0x2c   :  { %p183_p5 = por %p182_p4, %p181_p3 }
  0x2d   :  { %89 = vst [vmem:[#allocation9] sm:$0xff] %v76_v8  ;;  %91 = vst [vmem:[#allocation10] sm:$0xff] %v82_v9 }
  0x2e   :  { %p184_p6 = pnand %p183_p5, %p177_p2 }
  0x30   :  { %187 = shalt.err (!%p184_p6)
}
  0x31   :  { %s188_s16 = scalar_lea.hbm %s304_s2, 128 }
  0x32   :  { %p189_p7 = scmp.ne.s32.totalorder %s304_s2, %s188_s16  ;;  %p192_p8 = scmp.lt.u32.totalorder %s188_s16, %s304_s2 }
  0x34   :  { %p194_p9 = pnand %p192_p8, %p189_p7 }
  0x36   :  { %197 = shalt.err (!%p194_p9)
}
  0x37   :  { %101 = dma.vmem_to_hbm [thread:$0]  %s99_s11, 128, %s304_s2, [#allocation6]  }
  0x38   :  { %s198_s23 = scalar_lea.vmem %s109_s13, 128  ;;  %p203_p11 = scmp.lt.s32.totalorder %s109_s13, %s109_s13 }
  0x39   :  { %p199_p10 = scmp.ne.s32.totalorder %s109_s13, %s198_s23  ;;  %p204_p12 = scmp.lt.s32.totalorder %s198_s23, %s198_s23 }
  0x3b   :  { %p205_p13 = por %p204_p12, %p203_p11 }
  0x3d   :  { %p206_p0 = pnand %p205_p13, %p199_p10 }
  0x3f   :  { %209 = shalt.err (!%p206_p0)
}
  0x40   :  { %s210_s26 = scalar_lea.hbm %s305_s3, 128 }
  0x41   :  { %p211_p1 = scmp.ne.s32.totalorder %s305_s3, %s210_s26  ;;  %p214_p2 = scmp.lt.u32.totalorder %s210_s26, %s305_s3 }
  0x43   :  { %p216_p3 = pnand %p214_p2, %p211_p1 }
  0x45   :  { %219 = shalt.err (!%p216_p3)
}
  0x46   :  { %111 = dma.vmem_to_hbm [thread:$0]  %s109_s13, 128, %s305_s3, [#allocation11]  }
  0x47   :  { %224 = dma.done.wait [#allocation6], 128  }
  0x48   :  { %225 = vsyncadd [#allocation6], 4294967168 }
  0x49   :  { %226 = dma.done.wait [#allocation11], 128  }
  0x4a   :  { %227 = vsyncadd [#allocation11], 4294967168 }
  0x4b   :  { %118 = vsyncpa [#allocation5], 1 }
  0x4c   :  { %119 = vsyncpa [#allocation8], 1 }
  0x4d   :  { %120 = vsyncpa [#allocation6], 1 }
  0x4e   :  { %121 = vsyncpa [#allocation11], 1 }

</bundles_post_ra>
